<compile_context>
chip_gen: v5e
topology: v5e:2x2
jax: 0.10.0
libtpu: 0.0.40
codegen_flags: <defaults>
</compile_context>

<pallas_src>
import jax
import jax.numpy as jnp
from jax.experimental import pallas as pl
from jax.experimental.pallas import tpu as pltpu


def _triplet_kernel(margin_ref, im_ref, cap_ref, out_ref,
                    rowmax_ref, diag_i_ref, colmax_ref, diag_c_ref, loss_ref):
    i = pl.program_id(0)
    j = pl.program_id(1)
    n_i = pl.num_programs(0)
    n_j = pl.num_programs(1)
    t_b = im_ref.shape[0]

    margin = margin_ref[0]

    # ---- init persistent accumulators -------------------------------------------------
    @pl.when(jnp.logical_and(i == 0, j == 0))
    def _():
        colmax_ref[...] = jnp.full(colmax_ref.shape, -jnp.inf, jnp.float32)
        loss_ref[0] = jnp.float32(0.0)
        out_ref[0, 0] = jnp.float32(0.0)

    @pl.when(j == 0)
    def _():
        rowmax_ref[...] = jnp.full(rowmax_ref.shape, -jnp.inf, jnp.float32)

    # ---- L2-normalize rows (f32 math; all-zero row -> inf, same as the reference) -----
    im = im_ref[...].astype(jnp.float32)
    cap = cap_ref[...].astype(jnp.float32)
    im_n = im * jax.lax.rsqrt(jnp.sum(im * im, axis=-1, keepdims=True))
    cap_n = cap * jax.lax.rsqrt(jnp.sum(cap * cap, axis=-1, keepdims=True))

    # Keep MXU operands in bf16 when the caller's embeddings are bf16 (halves VMEM/HBM
    # traffic, bf16 MXU path); f32 inputs stay f32 end-to-end.
    if im_ref.dtype == jnp.bfloat16:
        im_mm, cap_mm = im_n.astype(jnp.bfloat16), cap_n.astype(jnp.bfloat16)
    else:
        im_mm, cap_mm = im_n, cap_n

    # (tB, tB) cosine-similarity tile; contract last dims -> no rhs transpose copy.
    scores = jax.lax.dot_general(
        im_mm, cap_mm, (((1,), (1,)), ((), ())),
        preferred_element_type=jnp.float32)

    # Global-diagonal mask inside this tile (non-empty only when i == j).
    row_id = jax.lax.broadcasted_iota(jnp.int32, (t_b, t_b), 0)
    col_id = jax.lax.broadcasted_iota(jnp.int32, (t_b, t_b), 1)
    is_diag_tile = i == j
    eye = jnp.logical_and(row_id == col_id, is_diag_tile)
    masked = jnp.where(eye, -jnp.inf, scores)

    # ---- matching-pair diagonal (computed only on the n_i diagonal tiles) -------------
    @pl.when(is_diag_tile)
    def _():
        # d1 for the rows of tile i: a (tB, D) lane reduction.
        diag_i_ref[...] = jnp.sum(im_n * cap_n, axis=-1, keepdims=True)
        # d2 for the columns of tile j, laid out along lanes (row j of the scratch).
        diag_c_ref[pl.ds(j, 1), :] = jnp.sum(
            jnp.where(eye, scores, 0.0), axis=0, keepdims=True)

    # ---- streaming row / column maxima of off-diagonal scores -------------------------
    rowmax_ref[...] = jnp.maximum(rowmax_ref[...],
                                  jnp.max(masked, axis=1, keepdims=True))
    col_cur = colmax_ref[pl.ds(j, 1), :]
    colmax_ref[pl.ds(j, 1), :] = jnp.maximum(
        col_cur, jnp.max(masked, axis=0, keepdims=True))

    # ---- finalize this row tile (relu after max is valid: relu is monotone) -----------
    @pl.when(j == n_j - 1)
    def _():
        cost_s = jnp.maximum(margin + rowmax_ref[...] - diag_i_ref[...], 0.0)
        loss_ref[0] = loss_ref[0] + jnp.sum(cost_s)

    # ---- finalize columns + write the scalar loss on the very last grid step ----------
    @pl.when(jnp.logical_and(i == n_i - 1, j == n_j - 1))
    def _():
        cost_im = jnp.maximum(margin + colmax_ref[...] - diag_c_ref[...], 0.0)
        out_ref[0, 0] = loss_ref[0] + jnp.sum(cost_im)


def _pick_tile(b):
    # Largest "nice" tile that divides B; fall back to a single tile otherwise.
    # (128-multiples keep MXU tiles full and lane slices aligned on all generations.)
    for t in (512, 256, 128):
        if b > t and b % t == 0:
            return t
    return b


def triplet_loss(images, captions, margin=0.2):
    """images: (B, D), captions: (B, D) -> scalar float32 loss."""
    B, D = images.shape
    assert captions.shape == (B, D)
    t_b = _pick_tile(B)
    n_i = B // t_b
    n_j = B // t_b

    margin_arr = jnp.full((1,), margin, dtype=jnp.float32)

    grid_spec = pltpu.PrefetchScalarGridSpec(
        num_scalar_prefetch=0,
        grid=(n_i, n_j),
        in_specs=[
            pl.BlockSpec(memory_space=pltpu.MemorySpace.SMEM),   # margin scalar
            pl.BlockSpec((t_b, D), lambda i, j: (i, 0)),         # image rows of tile i
            pl.BlockSpec((t_b, D), lambda i, j: (j, 0)),         # caption rows of tile j
        ],
        out_specs=pl.BlockSpec(memory_space=pltpu.MemorySpace.SMEM),
        scratch_shapes=[
            pltpu.VMEM((t_b, 1), jnp.float32),    # rowmax (per row of tile i)
            pltpu.VMEM((t_b, 1), jnp.float32),    # diag for rows of tile i
            pltpu.VMEM((n_j, t_b), jnp.float32),  # colmax, row j = column-tile j
            pltpu.VMEM((n_j, t_b), jnp.float32),  # diag for columns, same layout
            pltpu.SMEM((1,), jnp.float32),        # running loss accumulator
        ],
    )

    out = pl.pallas_call(
        _triplet_kernel,
        out_shape=jax.ShapeDtypeStruct((1, 1), jnp.float32),
        grid_spec=grid_spec,
        compiler_params=pltpu.CompilerParams(
            # Column maxima / loss accumulate across BOTH axes -> no parallel axes.
            dimension_semantics=("arbitrary", "arbitrary"),
            vmem_limit_bytes=48 * 1024 * 1024,
        ),
    )(margin_arr, images, captions)
    return out[0, 0]


def _reference_loss(images, captions, margin=0.2):
    im_n = images / jnp.linalg.norm(images, axis=-1, keepdims=True)
    cap_n = captions / jnp.linalg.norm(captions, axis=-1, keepdims=True)
    scores = jnp.matmul(im_n, cap_n.T, precision=jax.lax.Precision.HIGHEST)
    diag = jnp.diag(scores)
    d1 = diag[:, None]
    d2 = diag[None, :]
    eye = jnp.eye(scores.shape[0], dtype=bool)
    cost_s = jnp.where(eye, 0.0, jnp.maximum(margin + scores - d1, 0.0))
    cost_im = jnp.where(eye, 0.0, jnp.maximum(margin + scores - d2, 0.0))
    return jnp.sum(jnp.max(cost_s, axis=1)) + jnp.sum(jnp.max(cost_im, axis=0))


if __name__ == "__main__":
    key = jax.random.PRNGKey(0)
    k1, k2, k3, k4 = jax.random.split(key, 4)

    # Small shape (single-tile path), matching the module's toy usage.
    B, D = 8, 32
    images = jax.random.normal(k1, (B, D), dtype=jnp.float32)
    captions = jax.random.normal(k2, (B, D), dtype=jnp.float32)
    loss = triplet_loss(images, captions, margin=0.2)
    jax.block_until_ready(loss)
    ref = _reference_loss(images, captions, margin=0.2)
    assert jnp.allclose(loss, ref, rtol=1e-4, atol=1e-4), (loss, ref)

    # Moderately larger shape exercising the tiled 2-D grid path (2x2 tiles of 128).
    B2, D2 = 256, 128
    images2 = jax.random.normal(k3, (B2, D2), dtype=jnp.float32)
    captions2 = jax.random.normal(k4, (B2, D2), dtype=jnp.float32)
    loss2 = triplet_loss(images2, captions2, margin=0.2)
    jax.block_until_ready(loss2)
    ref2 = _reference_loss(images2, captions2, margin=0.2)
    assert jnp.allclose(loss2, ref2, rtol=1e-4, atol=1e-3), (loss2, ref2)

    print("KERNEL_OK")
</pallas_src>

<mosaic_0001>
module attributes {stable_mosaic.version = 11 : i64} {
  func.func @_triplet_kernel(%arg0: i32, %arg1: i32, %arg2: memref<1xf32, #tpu.memory_space<smem>>, %arg3: memref<8x32xf32, #tpu.memory_space<vmem>>, %arg4: memref<8x32xf32, #tpu.memory_space<vmem>>, %arg5: memref<1x1xf32, #tpu.memory_space<smem>>, %arg6: memref<8x1xf32, #tpu.memory_space<vmem>>, %arg7: memref<8x1xf32, #tpu.memory_space<vmem>>, %arg8: memref<1x8xf32, #tpu.memory_space<vmem>>, %arg9: memref<1x8xf32, #tpu.memory_space<vmem>>, %arg10: memref<1xf32, #tpu.memory_space<smem>>) attributes {dimension_semantics = [#tpu.dimension_semantics<arbitrary>, #tpu.dimension_semantics<arbitrary>], iteration_bounds = array<i64: 1, 1>, scalar_prefetch = 0 : i64, scratch_operands = 5 : i64, tpu.core_type = #tpu.core_type<tc>, window_params = [{transform_indices = @transform_0, window_bounds = array<i64: 1>}, {transform_indices = @transform_1, window_bounds = array<i64: 8, 32>}, {transform_indices = @transform_2, window_bounds = array<i64: 8, 32>}, {transform_indices = @transform_3, window_bounds = array<i64: 1, 1>}]} {
    %c0 = arith.constant 0 : index
    %0 = memref.load %arg2[%c0] : memref<1xf32, #tpu.memory_space<smem>>
    %c0_i32 = arith.constant 0 : i32
    %1 = arith.cmpi eq, %arg0, %c0_i32 : i32
    %c0_i32_0 = arith.constant 0 : i32
    %2 = arith.cmpi eq, %arg1, %c0_i32_0 : i32
    %3 = arith.andi %1, %2 : i1
    %4 = arith.extui %3 : i1 to i32
    %c0_i32_1 = arith.constant 0 : i32
    %5 = arith.cmpi ne, %4, %c0_i32_1 : i32
    scf.if %5 {
      %cst_25 = arith.constant 0xFF800000 : f32
      %54 = vector.broadcast %cst_25 : f32 to vector<1x8xf32>
      %c0_26 = arith.constant 0 : index
      %c0_27 = arith.constant 0 : index
      %55 = vector.load %arg8[%c0_26, %c0_27] : memref<1x8xf32, #tpu.memory_space<vmem>>, vector<1x8xf32>
      tpu.vector_store %arg8[%c0_26, %c0_27], %54 {strides = array<i32>} : memref<1x8xf32, #tpu.memory_space<vmem>>, vector<1x8xf32>,
      %cst_28 = arith.constant 0.000000e+00 : f32
      %c0_29 = arith.constant 0 : index
      %56 = memref.load %arg10[%c0_29] : memref<1xf32, #tpu.memory_space<smem>>
      memref.store %cst_28, %arg10[%c0_29] : memref<1xf32, #tpu.memory_space<smem>>
      %cst_30 = arith.constant 0.000000e+00 : f32
      %c0_31 = arith.constant 0 : index
      %c0_32 = arith.constant 0 : index
      %57 = memref.load %arg5[%c0_31, %c0_32] : memref<1x1xf32, #tpu.memory_space<smem>>
      memref.store %cst_30, %arg5[%c0_31, %c0_32] : memref<1x1xf32, #tpu.memory_space<smem>>
    } else {
    }
    %c0_i32_2 = arith.constant 0 : i32
    %6 = arith.cmpi eq, %arg1, %c0_i32_2 : i32
    %7 = arith.extui %6 : i1 to i32
    %c0_i32_3 = arith.constant 0 : i32
    %8 = arith.cmpi ne, %7, %c0_i32_3 : i32
    scf.if %8 {
      %cst_25 = arith.constant 0xFF800000 : f32
      %54 = vector.broadcast %cst_25 : f32 to vector<8x1xf32>
      %c0_26 = arith.constant 0 : index
      %c0_27 = arith.constant 0 : index
      %55 = vector.load %arg6[%c0_26, %c0_27] : memref<8x1xf32, #tpu.memory_space<vmem>>, vector<8x1xf32>
      tpu.vector_store %arg6[%c0_26, %c0_27], %54 {strides = array<i32>} : memref<8x1xf32, #tpu.memory_space<vmem>>, vector<8x1xf32>,
    } else {
    }
    %c0_4 = arith.constant 0 : index
    %c0_5 = arith.constant 0 : index
    %9 = vector.load %arg3[%c0_4, %c0_5] : memref<8x32xf32, #tpu.memory_space<vmem>>, vector<8x32xf32>
    %c0_6 = arith.constant 0 : index
    %c0_7 = arith.constant 0 : index
    %10 = vector.load %arg4[%c0_6, %c0_7] : memref<8x32xf32, #tpu.memory_space<vmem>>, vector<8x32xf32>
    %11 = arith.mulf %9, %9 : vector<8x32xf32>
    %cst = arith.constant dense<0.000000e+00> : vector<8xf32>
    %12 = vector.multi_reduction <add>, %11, %cst [1] : vector<8x32xf32> to vector<8xf32>
    %13 = vector.shape_cast %12 : vector<8xf32> to vector<8x1xf32>
    %14 = math.rsqrt %13 : vector<8x1xf32>
    %15 = vector.broadcast %14 : vector<8x1xf32> to vector<8x32xf32>
    %16 = arith.mulf %9, %15 : vector<8x32xf32>
    %17 = arith.mulf %10, %10 : vector<8x32xf32>
    %cst_8 = arith.constant dense<0.000000e+00> : vector<8xf32>
    %18 = vector.multi_reduction <add>, %17, %cst_8 [1] : vector<8x32xf32> to vector<8xf32>
    %19 = vector.shape_cast %18 : vector<8xf32> to vector<8x1xf32>
    %20 = math.rsqrt %19 : vector<8x1xf32>
    %21 = vector.broadcast %20 : vector<8x1xf32> to vector<8x32xf32>
    %22 = arith.mulf %10, %21 : vector<8x32xf32>
    %cst_9 = arith.constant dense<0.000000e+00> : vector<8x8xf32>
    %23 = tpu.matmul %16, %22, %cst_9 {dimension_numbers = #tpu.dot_dimension_numbers<[1], [1], [0], [0], [0, 0, 1, 0], [], []>} : vector<8x32xf32>, vector<8x32xf32>, vector<8x8xf32> -> vector<8x8xf32>
    %24 = tpu.iota {dimensions = array<i32: 0>} : vector<8x8xi32>
    %25 = tpu.iota {dimensions = array<i32: 1>} : vector<8x8xi32>
    %26 = arith.cmpi eq, %arg0, %arg1 : i32
    %27 = arith.cmpi eq, %24, %25 : vector<8x8xi32>
    %28 = vector.broadcast %26 : i1 to vector<8x8xi1>
    %29 = arith.andi %27, %28 : vector<8x8xi1>
    %cst_10 = arith.constant 0xFF800000 : f32
    %30 = vector.broadcast %cst_10 : f32 to vector<8x8xf32>
    %31 = arith.select %29, %30, %23 : vector<8x8xi1>, vector<8x8xf32>
    %32 = arith.extui %26 : i1 to i32
    %c0_i32_11 = arith.constant 0 : i32
    %33 = arith.cmpi ne, %32, %c0_i32_11 : i32
    scf.if %33 {
      %54 = arith.mulf %16, %22 : vector<8x32xf32>
      %cst_25 = arith.constant dense<0.000000e+00> : vector<8xf32>
      %55 = vector.multi_reduction <add>, %54, %cst_25 [1] : vector<8x32xf32> to vector<8xf32>
      %56 = vector.shape_cast %55 : vector<8xf32> to vector<8x1xf32>
      %c0_26 = arith.constant 0 : index
      %c0_27 = arith.constant 0 : index
      %57 = vector.load %arg7[%c0_26, %c0_27] : memref<8x1xf32, #tpu.memory_space<vmem>>, vector<8x1xf32>
      tpu.vector_store %arg7[%c0_26, %c0_27], %56 {strides = array<i32>} : memref<8x1xf32, #tpu.memory_space<vmem>>, vector<8x1xf32>,
      %cst_28 = arith.constant 0.000000e+00 : f32
      %58 = vector.broadcast %cst_28 : f32 to vector<8x8xf32>
      %59 = arith.select %29, %23, %58 : vector<8x8xi1>, vector<8x8xf32>
      %cst_29 = arith.constant dense<0.000000e+00> : vector<8xf32>
      %60 = vector.multi_reduction <add>, %59, %cst_29 [0] : vector<8x8xf32> to vector<8xf32>
      %61 = vector.shape_cast %60 : vector<8xf32> to vector<1x8xf32>
      %62 = arith.index_cast %arg1 : i32 to index
      %c0_30 = arith.constant 0 : index
      %63 = vector.load %arg9[%62, %c0_30] : memref<1x8xf32, #tpu.memory_space<vmem>>, vector<1x8xf32>
      tpu.vector_store %arg9[%62, %c0_30], %61 {strides = array<i32>} : memref<1x8xf32, #tpu.memory_space<vmem>>, vector<1x8xf32>,
    } else {
    }
    %c0_12 = arith.constant 0 : index
    %c0_13 = arith.constant 0 : index
    %34 = vector.load %arg6[%c0_12, %c0_13] : memref<8x1xf32, #tpu.memory_space<vmem>>, vector<8x1xf32>
    %cst_14 = arith.constant dense<0xFF800000> : vector<8xf32>
    %35 = vector.multi_reduction <maximumf>, %31, %cst_14 [1] : vector<8x8xf32> to vector<8xf32>
    %36 = vector.shape_cast %35 : vector<8xf32> to vector<8x1xf32>
    %37 = arith.maximumf %34, %36 : vector<8x1xf32>
    %c0_15 = arith.constant 0 : index
    %c0_16 = arith.constant 0 : index
    %38 = vector.load %arg6[%c0_15, %c0_16] : memref<8x1xf32, #tpu.memory_space<vmem>>, vector<8x1xf32>
    tpu.vector_store %arg6[%c0_15, %c0_16], %37 {strides = array<i32>} : memref<8x1xf32, #tpu.memory_space<vmem>>, vector<8x1xf32>,
    %39 = arith.index_cast %arg1 : i32 to index
    %c0_17 = arith.constant 0 : index
    %40 = vector.load %arg8[%39, %c0_17] : memref<1x8xf32, #tpu.memory_space<vmem>>, vector<1x8xf32>
    %cst_18 = arith.constant dense<0xFF800000> : vector<8xf32>
    %41 = vector.multi_reduction <maximumf>, %31, %cst_18 [0] : vector<8x8xf32> to vector<8xf32>
    %42 = vector.shape_cast %41 : vector<8xf32> to vector<1x8xf32>
    %43 = arith.maximumf %40, %42 : vector<1x8xf32>
    %44 = arith.index_cast %arg1 : i32 to index
    %c0_19 = arith.constant 0 : index
    %45 = vector.load %arg8[%44, %c0_19] : memref<1x8xf32, #tpu.memory_space<vmem>>, vector<1x8xf32>
    tpu.vector_store %arg8[%44, %c0_19], %43 {strides = array<i32>} : memref<1x8xf32, #tpu.memory_space<vmem>>, vector<1x8xf32>,
    %c0_i32_20 = arith.constant 0 : i32
    %46 = arith.cmpi eq, %arg1, %c0_i32_20 : i32
    %47 = arith.extui %46 : i1 to i32
    %c0_i32_21 = arith.constant 0 : i32
    %48 = arith.cmpi ne, %47, %c0_i32_21 : i32
    scf.if %48 {
      %c0_25 = arith.constant 0 : index
      %c0_26 = arith.constant 0 : index
      %54 = vector.load %arg6[%c0_25, %c0_26] : memref<8x1xf32, #tpu.memory_space<vmem>>, vector<8x1xf32>
      %55 = vector.broadcast %0 : f32 to vector<8x1xf32>
      %56 = arith.addf %55, %54 : vector<8x1xf32>
      %c0_27 = arith.constant 0 : index
      %c0_28 = arith.constant 0 : index
      %57 = vector.load %arg7[%c0_27, %c0_28] : memref<8x1xf32, #tpu.memory_space<vmem>>, vector<8x1xf32>
      %58 = arith.subf %56, %57 : vector<8x1xf32>
      %cst_29 = arith.constant 0.000000e+00 : f32
      %59 = vector.broadcast %cst_29 : f32 to vector<8x1xf32>
      %60 = arith.maximumf %58, %59 : vector<8x1xf32>
      %c0_30 = arith.constant 0 : index
      %61 = memref.load %arg10[%c0_30] : memref<1xf32, #tpu.memory_space<smem>>
      %62 = vector.shape_cast %60 : vector<8x1xf32> to vector<1x8x1xf32>
      %cst_31 = arith.constant dense<0.000000e+00> : vector<1xf32>
      %63 = vector.multi_reduction <add>, %62, %cst_31 [1, 2] : vector<1x8x1xf32> to vector<1xf32>
      %64 = vector.shape_cast %63 : vector<1xf32> to vector<1x1x1xf32>
      %65 = vector.extract %64[0, 0, 0] : f32 from vector<1x1x1xf32>
      %66 = arith.addf %61, %65 : f32
      %c0_32 = arith.constant 0 : index
      %67 = memref.load %arg10[%c0_32] : memref<1xf32, #tpu.memory_space<smem>>
      memref.store %66, %arg10[%c0_32] : memref<1xf32, #tpu.memory_space<smem>>
    } else {
    }
    %c0_i32_22 = arith.constant 0 : i32
    %49 = arith.cmpi eq, %arg0, %c0_i32_22 : i32
    %c0_i32_23 = arith.constant 0 : i32
    %50 = arith.cmpi eq, %arg1, %c0_i32_23 : i32
    %51 = arith.andi %49, %50 : i1
    %52 = arith.extui %51 : i1 to i32
    %c0_i32_24 = arith.constant 0 : i32
    %53 = arith.cmpi ne, %52, %c0_i32_24 : i32
    scf.if %53 {
      %c0_25 = arith.constant 0 : index
      %c0_26 = arith.constant 0 : index
      %54 = vector.load %arg8[%c0_25, %c0_26] : memref<1x8xf32, #tpu.memory_space<vmem>>, vector<1x8xf32>
      %55 = vector.broadcast %0 : f32 to vector<1x8xf32>
      %56 = arith.addf %55, %54 : vector<1x8xf32>
      %c0_27 = arith.constant 0 : index
      %c0_28 = arith.constant 0 : index
      %57 = vector.load %arg9[%c0_27, %c0_28] : memref<1x8xf32, #tpu.memory_space<vmem>>, vector<1x8xf32>
      %58 = arith.subf %56, %57 : vector<1x8xf32>
      %cst_29 = arith.constant 0.000000e+00 : f32
      %59 = vector.broadcast %cst_29 : f32 to vector<1x8xf32>
      %60 = arith.maximumf %58, %59 : vector<1x8xf32>
      %c0_30 = arith.constant 0 : index
      %61 = memref.load %arg10[%c0_30] : memref<1xf32, #tpu.memory_space<smem>>
      %62 = vector.shape_cast %60 : vector<1x8xf32> to vector<1x1x8xf32>
      %cst_31 = arith.constant dense<0.000000e+00> : vector<1xf32>
      %63 = vector.multi_reduction <add>, %62, %cst_31 [1, 2] : vector<1x1x8xf32> to vector<1xf32>
      %64 = vector.shape_cast %63 : vector<1xf32> to vector<1x1x1xf32>
      %65 = vector.extract %64[0, 0, 0] : f32 from vector<1x1x1xf32>
      %66 = arith.addf %61, %65 : f32
      %c0_32 = arith.constant 0 : index
      %c0_33 = arith.constant 0 : index
      %67 = memref.load %arg5[%c0_32, %c0_33] : memref<1x1xf32, #tpu.memory_space<smem>>
      memref.store %66, %arg5[%c0_32, %c0_33] : memref<1x1xf32, #tpu.memory_space<smem>>
    } else {
    }
    return
  }
  func.func @transform_0(%arg0: i32, %arg1: i32) -> i32 {
    %c0_i32 = arith.constant 0 : i32
    %c0_i32_0 = arith.constant 0 : i32
    return %c0_i32 : i32
  }
  func.func @transform_1(%arg0: i32, %arg1: i32) -> (i32, i32) {
    %c0_i32 = arith.constant 0 : i32
    %c0_i32_0 = arith.constant 0 : i32
    return %arg0, %c0_i32 : i32, i32
  }
  func.func @transform_2(%arg0: i32, %arg1: i32) -> (i32, i32) {
    %c0_i32 = arith.constant 0 : i32
    %c0_i32_0 = arith.constant 0 : i32
    return %arg1, %c0_i32 : i32, i32
  }
  func.func @transform_3(%arg0: i32, %arg1: i32) -> (i32, i32) {
    %c0_i32 = arith.constant 0 : i32
    %c0_i32_0 = arith.constant 0 : i32
    %c0_i32_1 = arith.constant 0 : i32
    return %c0_i32, %c0_i32_0 : i32, i32
  }
}

</mosaic_0001>

<bundles_post_ra>
// kernel: tpu_custom_call.1
= control target key start
LH: loop header
LB: loop body
LE: loop exit
PB: predicated region body
PF: predicated region fallthrough
CT: control target
= control target key end

     0   :  { %9 = vsyncpa [#allocation9], 0  ;;  %s362_s0 = inlined_call_operand.<no memory space> [shape: f32[1], index: 0, kind: input, shape index: {}]   ;;  %s363_s1 = inlined_call_operand.hbm [shape: f32[8,32], index: 1, kind: input, shape index: {}]   ;;  %s364_s2 = inlined_call_operand.hbm [shape: f32[8,32], index: 2, kind: input, shape index: {}]   ;;  %s365_s3 = inlined_call_operand.hbm [shape: f32[1,1], index: 3, kind: output, shape index: {}]  }
   0x1   :  { %10 = vsyncpa [#allocation12], 0 }
   0x2   :  { %11 = vsyncpa [#allocation10], 0  ;;  %s19_s14 = sshll.u32 %s363_s1, 4  ;;  %s313_s15 = smov [#allocation8]   ;;  %s20_s14 = int_to_ptr.hbm [resolvable:$true] %s19_s14 }
   0x3   :  { %s21_s16 = sshll.u32 %s313_s15, 4  ;;  %s30_s19 = sshll.u32 %s364_s2, 4  ;;  %s22_s16 = int_to_ptr.vmem [resolvable:$true] %s21_s16  ;;  %s31_s19 = int_to_ptr.hbm [resolvable:$true] %s30_s19 }
   0x4   :  { %24 = dma.hbm_to_vmem [thread:$0]  %s20_s14, 128, %s22_s16, [#allocation9]  }
   0x5   :  { %s314_s20 = smov [#allocation11]  }
   0x6   :  { %s32_s21 = sshll.u32 %s314_s20, 4  ;;  %s33_s21 = int_to_ptr.vmem [resolvable:$true] %s32_s21 }
   0x7   :  { %35 = dma.hbm_to_vmem [thread:$0]  %s31_s19, 128, %s33_s21, [#allocation12]  }
   0x8   :  { %307 = dma.done.wait [#allocation9], 128  }
   0x9   :  { %308 = vsyncadd [#allocation9], 4294967168 }
   0xa   :  { %309 = dma.done.wait [#allocation12], 128  }
   0xb   :  { %310 = vsyncadd [#allocation12], 4294967168  ;;  %v63_v0 = vld [vmem:[#allocation11] sm:$0xff]  ;;  %vm65_vm0 = vcmask 261120   ;;  %v62_v2 = vld [vmem:[#allocation8] sm:$0xff]  ;;  %vm51_vm7 = vcmask 57344   ;;  %v121_v26 = vlaneseq  ;;  %v174_v54 = vstv %s362_s0 }
   0xc   :  { %v80_v1 = vmul.f32 %v63_v0, %v63_v0  ;;  %v64_v4 = vmul.f32 %v62_v2, %v62_v2  ;;  %v315_v25 = vmov -inf   ;;  %vm60_vm8 = vcmask 7168   ;;  %s220_s23 = sshll.u32 %s365_s3, 4  ;;  %s316_s27 = smov [#allocation13]   ;;  %s221_s23 = int_to_ptr.hbm [resolvable:$true] %s220_s23 }
   0xd   :  { %52 = vst.msk [vmem:[#allocation4] sm:$0x1] %vm51_vm7, %v315_v25  ;;  %v122_v27 = vshrl.u32 %v121_v26, 7  ;;  %v124_v28 = vand.u32 127, %v121_v26  ;;  %vm142_vm10 = vcmask 64512  }
   0xe   :  { %v81_v3 = vsel %vm65_vm0, %v80_v1, 0.0  ;;  %v66_v5 = vsel %vm65_vm0, %v64_v4, 0.0  ;;  %61 = vst.msk [vmem:[#allocation2] sm:$0xff] %vm60_vm8, %v315_v25 }
   0xf   :  { %82 = vadd.xlane.f32.xlu0 %v81_v3  ;;  %vm126_vm9 = vcmp.eq.s32.totalorder %v122_v27, %v124_v28 }
  0x14   :  { %v160_v45 = vld [vmem:[#allocation4] sm:$0x1] }
  0x15   :  { %v152_v49 = vld [vmem:[#allocation2] sm:$0xff] }
  0x17   :  { %67 = vadd.xlane.f32.xlu0 %v66_v5 }
  0x82   :  { %v83_v6 = vpop.xlane.xlu0 %82 }
  0x83   :  { %243 = vrsqrt.f32 %v83_v6  ;;  %vm90_vm2 = vweird.f32 %v83_v6 }
  0x89   :  { %v244_v7 = vpop.eup %243 }
  0x8a   :  { %v85_v8 = vmul.f32 %v244_v7, %v83_v6  ;;  %v68_v9 = vpop.xlane.xlu0 %67  ;;  %vm91_vm1 = vweird.f32 %v244_v7 }
  0x8b   :  { %245 = vrsqrt.f32 %v68_v9  ;;  %vm92_vm3 = vmor %vm90_vm2, %vm91_vm1  ;;  %vm75_vm5 = vweird.f32 %v68_v9 }
  0x8c   :  { %v86_v10 = vmul.f32 %v244_v7, %v85_v8 }
  0x8e   :  { %v87_v11 = vmul.f32 0.5, %v86_v10 }
  0x90   :  { %v88_v12 = vsub.f32 1.5, %v87_v11 }
  0x91   :  { %v246_v13 = vpop.eup %245 }
  0x92   :  { %v70_v14 = vmul.f32 %v246_v13, %v68_v9  ;;  %v89_v15 = vmul.f32 %v244_v7, %v88_v12  ;;  %vm76_vm4 = vweird.f32 %v246_v13 }
  0x93   :  { %vm77_vm6 = vmor %vm75_vm5, %vm76_vm4 }
  0x94   :  { %v71_v16 = vmul.f32 %v246_v13, %v70_v14  ;;  %v93_v17 = vsel %vm92_vm3, %v244_v7, %v89_v15 }
  0x95   :  { %v94_v18 = vmul.f32 %v93_v17, %v63_v0 }
  0x96   :  { %v72_v19 = vmul.f32 0.5, %v71_v16 }
  0x97   :  { %232 = vmatpush.xpose.msk.msra.mxu0 %vm65_vm0, %v94_v18 }
  0x98   :  { %v73_v20 = vsub.f32 1.5, %v72_v19 }
  0x9a   :  { %v74_v21 = vmul.f32 %v246_v13, %v73_v20 }
  0x9c   :  { %v78_v22 = vsel %vm77_vm6, %v246_v13, %v74_v21 }
  0x9d   :  { %v79_v23 = vmul.f32 %v78_v22, %v62_v2 }
  0x9f   :  { %233 = vmatmul.msk.f32.vlgmr.msra.gmra.mxu0 %vm65_vm0, %v79_v23  ;;  %v135_v24 = vmul.f32 %v94_v18, %v79_v23 }
  0xa1   :  { %v136_v42 = vsel %vm65_vm0, %v135_v24, 0.0 }
 0x11c   :  { %v118_v29 = vpop.f32.mrf.mxu0 }
 0x11d   :  { %v131_v30 = vsel %vm126_vm9, -inf, %v118_v29  ;;  %v141_v31 = vsel %vm126_vm9, %v118_v29, 0.0 }
 0x11e   :  { %v143_v32 = vsel %vm142_vm10, %v141_v31, 0.0  ;;  %v154_v33 = vsel %vm142_vm10, %v131_v30, -inf }
 0x11f   :  { %v144_v34 = vrot.slane %v143_v32, 4  ;;  %v161_v35 = vrot.slane %v154_v33, 4  ;;  %155 = vmax.xlane.f32.xlu1 %v154_v33 }
 0x121   :  { %v145_v36 = vadd.f32 %v144_v34, %v143_v32  ;;  %v162_v37 = vmax.f32 %v154_v33, %v161_v35 }
 0x123   :  { %v146_v38 = vrot.slane %v145_v36, 2  ;;  %v163_v39 = vrot.slane %v162_v37, 2 }
 0x125   :  { %v147_v40 = vadd.f32 %v146_v38, %v145_v36  ;;  %v164_v41 = vmax.f32 %v162_v37, %v163_v39 }
 0x127   :  { %v148_v43 = vrot.slane %v147_v40, 1  ;;  %v165_v44 = vrot.slane %v164_v41, 1  ;;  %137 = vadd.xlane.f32.xlu1 %v136_v42 }
 0x129   :  { %v149_v46 = vadd.f32 %v148_v43, %v147_v40  ;;  %v166_v47 = vmax.f32 %v164_v41, %v165_v44 }
 0x12b   :  { %151 = vst.msk [vmem:[#allocation5] sm:$0x1] %vm51_vm7, %v149_v46  ;;  %v167_v48 = vmax.f32 %v160_v45, %v166_v47 }
 0x12d   :  { %169 = vst.msk [vmem:[#allocation4] sm:$0x1] %vm51_vm7, %v167_v48 }
 0x132   :  { %v198_v61 = vld [vmem:[#allocation5] sm:$0x1] }
 0x134   :  { %v195_v55 = vld [vmem:[#allocation4] sm:$0x1] }
 0x135   :  { %v197_v59 = vadd.f32 %v195_v55, %v174_v54 }
 0x137   :  { %v199_v63 = vsub.f32 %v197_v59, %v198_v61 }
 0x139   :  { %v200_v0 = vmax.f32 %v199_v63, 0.0 }
 0x13b   :  { %v202_v1 = vsel %vm51_vm7, %v200_v0, 0.0 }
 0x192   :  { %v156_v50 = vpop.xlane.xlu1 %155 }
 0x193   :  { %v157_v51 = vmax.f32 %v152_v49, %v156_v50 }
 0x195   :  { %159 = vst.msk [vmem:[#allocation2] sm:$0xff] %vm60_vm8, %v157_v51 }
 0x19a   :  { %v138_v52 = vpop.xlane.xlu1 %137 }
 0x19b   :  { %140 = vst.msk [vmem:[#allocation3] sm:$0xff] %vm60_vm8, %v138_v52 }
 0x19c   :  { %v173_v53 = vld [vmem:[#allocation2] sm:$0xff] }
 0x19d   :  { %v175_v56 = vadd.f32 %v174_v54, %v173_v53 }
 0x1a2   :  { %v176_v57 = vld [vmem:[#allocation3] sm:$0xff] }
 0x1a3   :  { %v177_v58 = vsub.f32 %v175_v56, %v176_v57 }
 0x1a5   :  { %v178_v60 = vmax.f32 %v177_v58, 0.0 }
 0x1a7   :  { %v180_v62 = vsel %vm60_vm8, %v178_v60, 0.0 }
 0x1a8   :  { %181 = vadd.xlane.f32.xlu2 %v180_v62 }
 0x1b0   :  { %203 = vadd.xlane.f32.xlu2 %v202_v1 }
 0x21b   :  { %v182_v2 = vpop.xlane.xlu2 %181 }
 0x21c   :  { %v183_v3 = vrot.slane %v182_v2, 4 }
 0x21e   :  { %v184_v4 = vadd.f32 %v183_v3, %v182_v2 }
 0x220   :  { %v185_v5 = vrot.slane %v184_v4, 2 }
 0x222   :  { %v186_v6 = vadd.f32 %v185_v5, %v184_v4 }
 0x223   :  { %v204_v7 = vpop.xlane.xlu2 %203 }
 0x224   :  { %v205_v8 = vrot.slane %v204_v7, 4  ;;  %v187_v9 = vrot.slane %v186_v6, 1 }
 0x226   :  { %v206_v10 = vadd.f32 %v205_v8, %v204_v7  ;;  %v188_v11 = vadd.f32 %v187_v9, %v186_v6 }
 0x228   :  { %v207_v12 = vrot.slane %v206_v10, 2  ;;  %234 = vpush %v188_v11 }
 0x22a   :  { %v208_v13 = vadd.f32 %v207_v12, %v206_v10 }
 0x22c   :  { %v209_v14 = vrot.slane %v208_v13, 1 }
 0x22e   :  { %v210_v15 = vadd.f32 %v209_v14, %v208_v13 }
 0x230   :  { %236 = vpush %v210_v15 }
 0x259   :  { %s235_s24 = spop %234 }
 0x261   :  { %s237_s25 = spop %236 }
 0x262   :  { %s212_s26 = sadd.f32 %s237_s25, %s235_s24 }
 0x264   :  { %214 = sst [smem:[#allocation13]] %s212_s26 }
 0x265   :  { %223 = dma.smem_to_hbm %s316_s27, 16, %s221_s23, [#allocation10]  }
 0x266   :  { %311 = dma.done.wait [#allocation10], 16  }
 0x267   :  { %312 = vsyncadd [#allocation10], 4294967280 }
 0x268   :  { %228 = sfence }
 0x269   :  { %229 = vsyncpa [#allocation9], 1 }
 0x26a   :  { %230 = vsyncpa [#allocation12], 1 }
 0x26b   :  { %231 = vsyncpa [#allocation10], 1 }

</bundles_post_ra>
